<compile_context>
chip_gen: v7x
topology: tpu7x:2x2x1
jax: 0.10.0
libtpu: 0.0.40
codegen_flags: <defaults>
</compile_context>

<pallas_src>
import math

import jax
import jax.numpy as jnp
from jax.experimental import pallas as pl
from jax.experimental.pallas import tpu as pltpu

# ---------------- model dimensions (small, deterministic) ----------------
N = 2      # batch
T = 8      # events per sequence
D = 2      # spatial dimension
F = 8      # Fourier features of time
H = 32     # hidden width
KQ = 32    # quadrature points for the temporal compensator

LOG_2PI = math.log(2.0 * math.pi)


def _softplus(x):
    # numerically stable softplus (VPU + EUP ops)
    return jnp.maximum(x, 0.0) + jnp.log1p(jnp.exp(-jnp.abs(x)))


# ------------------------------ kernel -----------------------------------
def _st_kernel(data_ref, selT_ref, wslab_ref, whT_ref, out_ref):
    # data : (3+D, R)  rows = [t ; x (D rows) ; event-mask ; quad-mask]
    # selT : (R, N)    segmented-sum selector, -dt/KQ baked into quad rows
    # wslab: (H, F+4)  [w1^T | freq | phase | b1 | b_heads]
    # whT  : (2D+1, H) fused head matrix, pre-transposed
    d = data_ref.shape[0] - 3
    f = wslab_ref.shape[1] - 4
    nhead = whT_ref.shape[0]

    data = data_ref[...]
    t_row = data[0:1, :]                 # (1, R)
    xT = data[1:1 + d, :]                # (D, R)
    m_ev = data[1 + d:2 + d, :]          # (1, R)  valid-event mask (0 on quad cols)
    m_q = data[2 + d:3 + d, :]           # (1, R)  quadrature indicator

    wslab = wslab_ref[...]
    w1T = wslab[:, 0:f]                  # (H, F)
    freqT = wslab[0:f, f:f + 1]          # (F, 1)
    phaseT = wslab[0:f, f + 1:f + 2]     # (F, 1)
    b1T = wslab[:, f + 2:f + 3]          # (H, 1)
    bhT = wslab[0:nhead, f + 3:f + 4]    # (2D+1, 1)

    # ---- shared time encoder, feature-major (rows along lanes) ----
    featT = jnp.sin(freqT * t_row + phaseT)                                    # (F, R)
    hT = jnp.tanh(jnp.dot(w1T, featT,
                          preferred_element_type=jnp.float32) + b1T)           # (H, R)
    headsT = jnp.dot(whT_ref[...], hT,
                     preferred_element_type=jnp.float32) + bhT                 # (2D+1, R)

    muT = headsT[0:d, :]                                                       # (D, R)
    lsT = headsT[d:2 * d, :]                                                   # (D, R)
    lamT = _softplus(headsT[2 * d:2 * d + 1, :])                               # (1, R)

    # ---- spatial: conditional Gaussian log-density (garbage on quad cols,
    #      zeroed by m_ev before the reduction) ----
    z = (xT - muT) * jnp.exp(-lsT)
    ll = jnp.sum(-0.5 * z * z - lsT - 0.5 * LOG_2PI,
                 axis=0, keepdims=True)                                        # (1, R)

    # ---- fused segmented reduction (single MXU matmul):
    #      row 0: masked spatial log-density
    #      row 1: masked log-intensity on event cols, raw intensity on quad
    #             cols (selector weight -dt/KQ turns it into the compensator) ----
    vals = jnp.concatenate(
        [m_ev * ll,
         m_ev * jnp.log(lamT + 1e-8) + m_q * lamT], axis=0)                    # (2, R)
    out_ref[...] = jnp.dot(vals, selT_ref[...],
                           preferred_element_type=jnp.float32)                 # (2, N)


# --------------------------- wrapper --------------------------------------
def combined_spatiotemporal_forward(event_times, spatial_locations, input_mask,
                                    t0, t1, params):
    n, tlen = event_times.shape
    d = spatial_locations.shape[-1]
    kq = KQ
    nt = n * tlen
    nq = n * kq

    freq, phase, w1, b1, wmu, wsig, wint, bint = params
    f = w1.shape[0]
    h = w1.shape[1]

    # ---- packed weight slab: [w1^T | freq | phase | b1 | b_heads] ----
    w1T = jnp.transpose(w1).astype(jnp.float32)                        # (H, F)
    cvec = jnp.zeros((h, 4), jnp.float32)
    cvec = cvec.at[:f, 0].set(freq.reshape(-1).astype(jnp.float32))
    cvec = cvec.at[:f, 1].set(phase.reshape(-1).astype(jnp.float32))
    cvec = cvec.at[:, 2].set(b1.reshape(-1).astype(jnp.float32))
    cvec = cvec.at[2 * d, 3].set(bint.reshape(-1).astype(jnp.float32)[0])
    wslab = jnp.concatenate([w1T, cvec], axis=1)                       # (H, F+4)

    # fused heads [mu | log_sigma | intensity], pre-transposed
    w_headsT = jnp.concatenate([wmu, wsig, wint], axis=1).T.astype(jnp.float32)  # (2D+1, H)

    # ---- runtime data slab: fused event + quadrature time row, x^T, masks ----
    t0b = jnp.broadcast_to(jnp.asarray(t0, jnp.float32).reshape(-1), (n,))
    t1b = jnp.broadcast_to(jnp.asarray(t1, jnp.float32).reshape(-1), (n,))
    dt = t1b - t0b                                                     # (N,)

    frac = (jnp.arange(kq, dtype=jnp.float32) + 0.5) / kq              # (KQ,)
    t_quad = t0b[:, None] + dt[:, None] * frac[None, :]                # (N, KQ)

    t_row = jnp.concatenate(
        [event_times.reshape(-1).astype(jnp.float32), t_quad.reshape(-1)], axis=0)  # (R,)
    xT = jnp.concatenate(
        [spatial_locations.astype(jnp.float32).reshape(nt, d).T,
         jnp.zeros((d, nq), jnp.float32)], axis=1)                     # (D, R)
    m_ev = jnp.concatenate(
        [input_mask.reshape(-1).astype(jnp.float32),
         jnp.zeros((nq,), jnp.float32)], axis=0)                       # (R,)
    m_q = jnp.concatenate(
        [jnp.zeros((nt,), jnp.float32), jnp.ones((nq,), jnp.float32)], axis=0)  # (R,)

    data = jnp.concatenate(
        [t_row[None, :], xT, m_ev[None, :], m_q[None, :]], axis=0)     # (3+D, R)

    # ---- selector with the compensator weight baked in:
    #      +1 on event columns of batch n, -dt[n]/KQ on its quad columns ----
    row_batch = jnp.concatenate(
        [jnp.repeat(jnp.arange(n), tlen), jnp.repeat(jnp.arange(n), kq)], axis=0)  # (R,)
    onehot = (row_batch[:, None] == jnp.arange(n)[None, :]).astype(jnp.float32)    # (R, N)
    quad_w = jnp.where(m_q[:, None] > 0.5, -(dt / kq)[None, :], 1.0)               # (R, N)
    selT = onehot * quad_w                                             # (R, N)

    vmem = pl.BlockSpec(memory_space=pltpu.MemorySpace.VMEM)
    out = pl.pallas_call(
        _st_kernel,
        out_shape=jax.ShapeDtypeStruct((2, n), jnp.float32),
        in_specs=[vmem, vmem, vmem, vmem],
        out_specs=vmem,
    )(data, selT, wslab, w_headsT)

    return out[0], out[1]                      # (space_loglik, time_loglik)


# --------------------------- pure-JAX reference ----------------------------
def _reference(event_times, spatial_locations, input_mask, t0, t1, params):
    freq, phase, w1, b1, wmu, wsig, wint, bint = params
    t = event_times[..., None].astype(jnp.float32)                 # (N,T,1)
    x = spatial_locations.astype(jnp.float32)                      # (N,T,D)
    m = input_mask[..., None].astype(jnp.float32)                  # (N,T,1)
    feat = jnp.sin(t * freq + phase)
    h = jnp.tanh(feat @ w1 + b1)
    mu = h @ wmu
    log_sig = h @ wsig
    z = (x - mu) * jnp.exp(-log_sig)
    ll_event = jnp.sum(-0.5 * z * z - log_sig - 0.5 * LOG_2PI, axis=-1, keepdims=True)
    space = jnp.sum(m * ll_event, axis=(1, 2))

    lam = _softplus(h @ wint + bint)
    log_term = jnp.sum(m * jnp.log(lam + 1e-8), axis=(1, 2))
    t0b = jnp.broadcast_to(jnp.asarray(t0, jnp.float32), (event_times.shape[0],))
    t1b = jnp.broadcast_to(jnp.asarray(t1, jnp.float32), (event_times.shape[0],))
    k = (jnp.arange(KQ, dtype=jnp.float32) + 0.5) / KQ
    s = t0b[:, None] + (t1b - t0b)[:, None] * k                     # (N,KQ)
    featq = jnp.sin(s[..., None] * freq + phase)
    hq = jnp.tanh(featq @ w1 + b1)
    lamq = _softplus(hq @ wint + bint)[..., 0]
    comp = (t1b - t0b) * jnp.mean(lamq, axis=-1)
    return space, log_term - comp


# ------------------------------- main --------------------------------------
if __name__ == "__main__":
    key = jax.random.PRNGKey(0)
    ks = jax.random.split(key, 12)

    # deterministic synthetic parameters (the module __init__ takes sub-models;
    # these are the synthetic sub-model weights)
    freq  = jax.random.normal(ks[0], (1, F), jnp.float32) * 0.5 + 0.5
    phase = jax.random.normal(ks[1], (1, F), jnp.float32) * 0.3
    w1    = jax.random.normal(ks[2], (F, H), jnp.float32) / jnp.sqrt(F)
    b1    = jax.random.normal(ks[3], (1, H), jnp.float32) * 0.1
    wmu   = jax.random.normal(ks[4], (H, D), jnp.float32) / jnp.sqrt(H)
    wsig  = jax.random.normal(ks[5], (H, D), jnp.float32) * 0.05
    wint  = jax.random.normal(ks[6], (H, 1), jnp.float32) / jnp.sqrt(H)
    bint  = jnp.full((1, 1), 0.2, jnp.float32)
    params = (freq, phase, w1, b1, wmu, wsig, wint, bint)

    # deterministic synthetic inputs matching the abstract forward signature
    event_times = jnp.sort(
        jax.random.uniform(ks[7], (N, T), jnp.float32, 0.0, 10.0), axis=-1)
    spatial_locations = jax.random.normal(ks[8], (N, T, D), jnp.float32)
    input_mask = jnp.concatenate(
        [jnp.ones((1, T), jnp.float32),
         jnp.concatenate([jnp.ones((1, T - 3)), jnp.zeros((1, 3))], axis=-1)],
        axis=0)
    t0 = jnp.zeros((N,), jnp.float32)
    t1 = jnp.full((N,), 10.0, jnp.float32)

    space_ll, time_ll = combined_spatiotemporal_forward(
        event_times, spatial_locations, input_mask, t0, t1, params)
    jax.block_until_ready((space_ll, time_ll))

    ref_space, ref_time = _reference(
        event_times, spatial_locations, input_mask, t0, t1, params)
    assert jnp.allclose(space_ll, ref_space, atol=1e-4, rtol=1e-4)
    assert jnp.allclose(time_ll, ref_time, atol=1e-4, rtol=1e-4)

    print("KERNEL_OK")
</pallas_src>

<mosaic_0001>
module attributes {stable_mosaic.version = 11 : i64} {
  func.func @_st_kernel(%arg0: memref<5x80xf32, #tpu.memory_space<vmem>>, %arg1: memref<80x2xf32, #tpu.memory_space<vmem>>, %arg2: memref<32x12xf32, #tpu.memory_space<vmem>>, %arg3: memref<5x32xf32, #tpu.memory_space<vmem>>, %arg4: memref<2x2xf32, #tpu.memory_space<vmem>>) attributes {dimension_semantics = [], scalar_prefetch = 0 : i64, scratch_operands = 0 : i64, tpu.core_type = #tpu.core_type<tc>} {
    %c0 = arith.constant 0 : index
    %c0_0 = arith.constant 0 : index
    %0 = vector.load %arg0[%c0, %c0_0] : memref<5x80xf32, #tpu.memory_space<vmem>>, vector<5x80xf32>
    %1 = vector.extract_strided_slice %0 {offsets = [0, 0], sizes = [1, 80], strides = [1, 1]} : vector<5x80xf32> to vector<1x80xf32>
    %2 = vector.extract_strided_slice %0 {offsets = [1, 0], sizes = [2, 80], strides = [1, 1]} : vector<5x80xf32> to vector<2x80xf32>
    %3 = vector.extract_strided_slice %0 {offsets = [3, 0], sizes = [1, 80], strides = [1, 1]} : vector<5x80xf32> to vector<1x80xf32>
    %4 = vector.extract_strided_slice %0 {offsets = [4, 0], sizes = [1, 80], strides = [1, 1]} : vector<5x80xf32> to vector<1x80xf32>
    %c0_1 = arith.constant 0 : index
    %c0_2 = arith.constant 0 : index
    %5 = vector.load %arg2[%c0_1, %c0_2] : memref<32x12xf32, #tpu.memory_space<vmem>>, vector<32x12xf32>
    %6 = vector.extract_strided_slice %5 {offsets = [0, 0], sizes = [32, 8], strides = [1, 1]} : vector<32x12xf32> to vector<32x8xf32>
    %7 = vector.extract_strided_slice %5 {offsets = [0, 8], sizes = [8, 1], strides = [1, 1]} : vector<32x12xf32> to vector<8x1xf32>
    %8 = vector.extract_strided_slice %5 {offsets = [0, 9], sizes = [8, 1], strides = [1, 1]} : vector<32x12xf32> to vector<8x1xf32>
    %9 = vector.extract_strided_slice %5 {offsets = [0, 10], sizes = [32, 1], strides = [1, 1]} : vector<32x12xf32> to vector<32x1xf32>
    %10 = vector.extract_strided_slice %5 {offsets = [0, 11], sizes = [5, 1], strides = [1, 1]} : vector<32x12xf32> to vector<5x1xf32>
    %11 = vector.broadcast %7 : vector<8x1xf32> to vector<8x80xf32>
    %12 = vector.broadcast %1 : vector<1x80xf32> to vector<8x80xf32>
    %13 = arith.mulf %11, %12 : vector<8x80xf32>
    %14 = vector.broadcast %8 : vector<8x1xf32> to vector<8x80xf32>
    %15 = arith.addf %13, %14 : vector<8x80xf32>
    %16 = math.sin %15 : vector<8x80xf32>
    %cst = arith.constant dense<0.000000e+00> : vector<32x80xf32>
    %17 = tpu.matmul %6, %16, %cst {dimension_numbers = #tpu.dot_dimension_numbers<[1], [0], [0], [1], [0, 0, 1, 1], [], []>} : vector<32x8xf32>, vector<8x80xf32>, vector<32x80xf32> -> vector<32x80xf32>
    %18 = vector.broadcast %9 : vector<32x1xf32> to vector<32x80xf32>
    %19 = arith.addf %17, %18 : vector<32x80xf32>
    %20 = math.tanh %19 : vector<32x80xf32>
    %c0_3 = arith.constant 0 : index
    %c0_4 = arith.constant 0 : index
    %21 = vector.load %arg3[%c0_3, %c0_4] : memref<5x32xf32, #tpu.memory_space<vmem>>, vector<5x32xf32>
    %cst_5 = arith.constant dense<0.000000e+00> : vector<5x80xf32>
    %22 = tpu.matmul %21, %20, %cst_5 {dimension_numbers = #tpu.dot_dimension_numbers<[1], [0], [0], [1], [0, 0, 1, 1], [], []>} : vector<5x32xf32>, vector<32x80xf32>, vector<5x80xf32> -> vector<5x80xf32>
    %23 = vector.broadcast %10 : vector<5x1xf32> to vector<5x80xf32>
    %24 = arith.addf %22, %23 : vector<5x80xf32>
    %25 = vector.extract_strided_slice %24 {offsets = [0, 0], sizes = [2, 80], strides = [1, 1]} : vector<5x80xf32> to vector<2x80xf32>
    %26 = vector.extract_strided_slice %24 {offsets = [2, 0], sizes = [2, 80], strides = [1, 1]} : vector<5x80xf32> to vector<2x80xf32>
    %27 = vector.extract_strided_slice %24 {offsets = [4, 0], sizes = [1, 80], strides = [1, 1]} : vector<5x80xf32> to vector<1x80xf32>
    %cst_6 = arith.constant 0.000000e+00 : f32
    %28 = vector.broadcast %cst_6 : f32 to vector<1x80xf32>
    %29 = arith.maximumf %27, %28 : vector<1x80xf32>
    %30 = math.absf %27 : vector<1x80xf32>
    %cst_7 = arith.constant 0.000000e+00 : f32
    %31 = vector.broadcast %cst_7 : f32 to vector<1x80xf32>
    %32 = arith.subf %31, %30 : vector<1x80xf32>
    %33 = math.exp %32 : vector<1x80xf32>
    %34 = math.log1p %33 : vector<1x80xf32>
    %35 = arith.addf %29, %34 : vector<1x80xf32>
    %36 = arith.subf %2, %25 : vector<2x80xf32>
    %cst_8 = arith.constant 0.000000e+00 : f32
    %37 = vector.broadcast %cst_8 : f32 to vector<2x80xf32>
    %38 = arith.subf %37, %26 : vector<2x80xf32>
    %39 = math.exp %38 : vector<2x80xf32>
    %40 = arith.mulf %36, %39 : vector<2x80xf32>
    %cst_9 = arith.constant -5.000000e-01 : f32
    %41 = vector.broadcast %cst_9 : f32 to vector<2x80xf32>
    %42 = arith.mulf %41, %40 : vector<2x80xf32>
    %43 = arith.mulf %42, %40 : vector<2x80xf32>
    %44 = arith.subf %43, %26 : vector<2x80xf32>
    %cst_10 = arith.constant 0.918938517 : f32
    %45 = vector.broadcast %cst_10 : f32 to vector<2x80xf32>
    %46 = arith.subf %44, %45 : vector<2x80xf32>
    %cst_11 = arith.constant dense<0.000000e+00> : vector<80xf32>
    %47 = vector.multi_reduction <add>, %46, %cst_11 [0] : vector<2x80xf32> to vector<80xf32>
    %48 = vector.shape_cast %47 : vector<80xf32> to vector<1x80xf32>
    %49 = arith.mulf %3, %48 : vector<1x80xf32>
    %cst_12 = arith.constant 9.99999993E-9 : f32
    %50 = vector.broadcast %cst_12 : f32 to vector<1x80xf32>
    %51 = arith.addf %35, %50 : vector<1x80xf32>
    %52 = math.log %51 : vector<1x80xf32>
    %53 = arith.mulf %3, %52 : vector<1x80xf32>
    %54 = arith.mulf %4, %35 : vector<1x80xf32>
    %55 = arith.addf %53, %54 : vector<1x80xf32>
    %56 = tpu.concatenate %49, %55 in 0 : vector<1x80xf32>, vector<1x80xf32> -> vector<2x80xf32>
    %c0_13 = arith.constant 0 : index
    %c0_14 = arith.constant 0 : index
    %57 = vector.load %arg1[%c0_13, %c0_14] : memref<80x2xf32, #tpu.memory_space<vmem>>, vector<80x2xf32>
    %cst_15 = arith.constant dense<0.000000e+00> : vector<2x2xf32>
    %58 = tpu.matmul %56, %57, %cst_15 {dimension_numbers = #tpu.dot_dimension_numbers<[1], [0], [0], [1], [0, 0, 1, 1], [], []>} : vector<2x80xf32>, vector<80x2xf32>, vector<2x2xf32> -> vector<2x2xf32>
    %c0_16 = arith.constant 0 : index
    %c0_17 = arith.constant 0 : index
    %59 = vector.load %arg4[%c0_16, %c0_17] : memref<2x2xf32, #tpu.memory_space<vmem>>, vector<2x2xf32>
    tpu.vector_store %arg4[%c0_16, %c0_17], %58 {strides = array<i32>} : memref<2x2xf32, #tpu.memory_space<vmem>>, vector<2x2xf32>,
    return
  }
}

</mosaic_0001>

<bundles_post_ra>
// kernel: tpu_custom_call.1
= control target key start
LH: loop header
LB: loop body
LE: loop exit
PB: predicated region body
PF: predicated region fallthrough
CT: control target
= control target key end

     0   :  { %v665_v1 = vmov 8   ;;  %s815_s0 = inlined_call_operand.vmem [shape: f32[5,80], index: 0, kind: input, shape index: {}]   ;;  %s816_s1 = inlined_call_operand.vmem [shape: f32[80,2], index: 1, kind: input, shape index: {}]   ;;  %s817_s2 = inlined_call_operand.vmem [shape: f32[32,12], index: 2, kind: input, shape index: {}]   ;;  %s818_s3 = inlined_call_operand.vmem [shape: f32[5,32], index: 3, kind: input, shape index: {}]   ;;  %s819_s4 = inlined_call_operand.hbm [shape: f32[2,2], index: 4, kind: output, shape index: {}]  }
   0x1   :  { %v707_v0 = vld [vmem:[%s817_s2] sm:$0xff]  ;;  %615 = vset.pattern.permute.xlu0 %v665_v1 }
   0x2   :  { %9 = vsyncpa [#allocation3], 0  ;;  %25 = vperm.xlu0 %615, %v707_v0   ;;  %v666_v2 = vmov 9   ;;  %vm161_vm0 = vcmask 64512   ;;  %v716_v3 = vld [vmem:[%s817_s2 + $0x18] sm:$0xff]  ;;  %v667_v4 = vmov 10   ;;  %v28_v7 = vlaneseq }
   0x3   :  { %536 = vmatprep.mubr.msk.f32.mxu1 %vm161_vm0, %v707_v0  ;;  %617 = vset.pattern.permute.xlu1 %v667_v4  ;;  %v723_v5 = vld [vmem:[%s817_s2 + $0x8] sm:$0xff]  ;;  %v729_v6 = vld [vmem:[%s817_s2 + $0x10] sm:$0xff]  ;;  %v735_v10 = vld [vmem:[%s815_s0] sm:$0x1f]  ;;  %v668_v27 = vmov 2102212464  }
   0x4   :  { %143 = vperm.xlu1 %617, %v707_v0   ;;  %v29_v8 = vshrl.u32 %v28_v7, 7  ;;  %v669_v29 = vmov 920167782   ;;  %v670_v33 = vmov 1326507024   ;;  %vm675_vm14 = vmmov 0  }
   0x5   :  { %v671_v35 = vmov 683565275   ;;  %v672_v37 = vmov 2475754826   ;;  %v673_v40 = vmov 2131351028  }
   0x6   :  { %616 = vset.pattern.permute.xlu0 %v666_v2  ;;  %v30_v9 = vsub.s32 0, %v29_v8  ;;  %vm264_vm15 = vcmask 261120  }
   0x7   :  { %34 = vperm.xlu0 %616, %v707_v0  }
   0x8   :  { %148 = vperm.xlu1 %617, %v723_v5   ;;  %v31_v12 = vrot.slane %v735_v10, %v30_v9 }
   0xb   :  { %618 = vset.pattern.permute.xlu0 %v667_v4 }
   0xc   :  { %158 = vperm.xlu0 %618, %v716_v3   ;;  %153 = vperm.xlu1 %617, %v729_v6  }
  0x81   :  { %v26_v11 = vpop.permute.xlu0 %25 }
  0x82   :  { %v32_v13 = vmul.f32 %v31_v12, %v26_v11 }
  0x86   :  { %v35_v14 = vpop.permute.xlu0 %34 }
  0x87   :  { %v738_v15 = vadd.f32 %v35_v14, %v32_v13 }
  0x89   :  { %v41_v16 = vand.u32 2139095040, %v738_v15  ;;  %v38_v17 = vand.u32 2147483647, %v738_v15  ;;  %vm40_vm8 = vcmp.lt.s32.totalorder %v738_v15, 0  ;;  %vm130_vm13 = vweird.f32 %v738_v15 }
  0x8b   :  { %v42_v18 = vshrl.u32 %v41_v16, 23  ;;  %v45_v20 = vand.u32 8388607, %v38_v17  ;;  %vm39_vm9 = vcmp.le.f32.partialorder %v38_v17, 0.7853982 }
  0x8d   :  { %v502_v19 = vadd.s32 4294967169, %v42_v18  ;;  %v46_v23 = vor.u32 8388608, %v45_v20 }
  0x8f   :  { %v48_v21 = vadd.s32 1, %v502_v19  ;;  %v86_v31 = vshll.u32 %v46_v23, 8 }
  0x91   :  { %vm49_vm1 = vcmp.gt.s32.totalorder %v48_v21, 0 }
  0x92   :  { %v50_v22 = vsel %vm49_vm1, %v48_v21, 0 }
  0x93   :  { %v52_v24 = vand.u32 31, %v50_v22  ;;  %v51_v25 = vshrl.u32 %v50_v22, 5 }
  0x95   :  { %v53_v26 = vsub.s32 32, %v52_v24  ;;  %v64_v28 = vshll.u32 %v668_v27, %v52_v24  ;;  %v67_v30 = vshll.u32 %v669_v29, %v52_v24  ;;  %v55_v36 = vshll.u32 %v671_v35, %v52_v24 }
  0x96   :  { %v58_v39 = vshll.u32 %v672_v37, %v52_v24  ;;  %v61_v42 = vshll.u32 %v673_v40, %v52_v24  ;;  %vm73_vm2 = vcmp.lt.s32.totalorder %v51_v25, 4  ;;  %vm70_vm3 = vcmp.lt.s32.totalorder %v51_v25, 1 }
  0x97   :  { %v65_v32 = vshrl.u32 %v669_v29, %v53_v26  ;;  %v68_v34 = vshrl.u32 %v670_v33, %v53_v26  ;;  %v56_v38 = vshrl.u32 %v672_v37, %v53_v26  ;;  %v59_v41 = vshrl.u32 %v673_v40, %v53_v26 }
  0x98   :  { %v62_v43 = vshrl.u32 %v668_v27, %v53_v26  ;;  %v54_v47 = vshrl.u32 %v671_v35, %v53_v26  ;;  %vm71_vm4 = vcmp.lt.s32.totalorder %v51_v25, 2  ;;  %vm72_vm5 = vcmp.lt.s32.totalorder %v51_v25, 3 }
  0x99   :  { %v66_v44 = vor.u32 %v65_v32, %v64_v28  ;;  %v69_v45 = vor.u32 %v68_v34, %v67_v30  ;;  %v57_v46 = vor.u32 %v56_v38, %v55_v36  ;;  %v60_v48 = vor.u32 %v59_v41, %v58_v39 }
  0x9a   :  { %v63_v49 = vor.u32 %v62_v43, %v61_v42 }
  0x9b   :  { %v79_v50 = vsel %vm73_vm2, %v66_v44, 920167782  ;;  %v83_v51 = vsel %vm73_vm2, %v69_v45, 1326507024  ;;  %v78_v53 = vsel %vm70_vm3, %v57_v46, %v60_v48  ;;  %v74_v56 = vsel %vm70_vm3, %v54_v47, %v57_v46 }
  0x9c   :  { %v75_v52 = vsel %vm73_vm2, %v63_v49, 2102212464  ;;  %v80_v54 = vsel %vm72_vm5, %v63_v49, %v79_v50  ;;  %v82_v55 = vsel %vm70_vm3, %v60_v48, %v63_v49  ;;  %v84_v59 = vsel %vm72_vm5, %v66_v44, %v83_v51  ;;  %v144_v51 = vpop.permute.xlu1 %143 }
  0x9d   :  { %v76_v57 = vsel %vm72_vm5, %v60_v48, %v75_v52  ;;  %v81_v58 = vsel %vm71_vm4, %v78_v53, %v80_v54  ;;  %v85_v60 = vsel %vm71_vm4, %v82_v55, %v84_v59  ;;  %v674_v49 = vmov 0.0|0.0   ;;  %v159_v55 = vpop.permute.xlu0 %158 }
  0x9e   :  { %v744_v61 = vmul.u32.u64.low %v86_v31, %v81_v58  ;;  %v745_v62 = vmul.u32.u64.high %v86_v31, %v81_v58, %v744_v61  ;;  %v747_v63 = vmul.u32.u64.low %v86_v31, %v85_v60  ;;  %v748_v1 = vmul.u32.u64.high %v86_v31, %v85_v60, %v747_v63  ;;  %582 = vmatprep.subr.bf16.mxu0 %v674_v49 }
  0x9f   :  { %v77_v2 = vsel %vm71_vm4, %v74_v56, %v76_v57  ;;  %v676_v50 = vmov 0.0   ;;  %vm400_vm2 = vcmask 1040384   ;;  %vm412_vm3 = vcmask 654336  }
  0xa0   :  { %v96_v4 = vadd.s32 1, %v745_v62  ;;  %v93_v7 = vmul.u32 %v86_v31, %v77_v2  ;;  %vm95_vm6 = vc.u32 %v748_v1, %v744_v61  ;;  %v94_v22 = vadd.s32 %v744_v61, %v748_v1  ;;  %573 = vmatprep.mubr.msk.f32.mxu0 %vm675_vm14, %v676_v50  ;;  %v259_v2 = vld [vmem:[%s818_s3] sm:$0x1f] }
  0xa1   :  { %vm486_vm4 = vcmask 9216  }
  0xa2   :  { %v97_v8 = vsel %vm95_vm6, %v96_v4, %v745_v62  ;;  %v402_v4 = vld [vmem:[%s816_s1] sm:$0xff] }
  0xa3   :  { %v98_v9 = vadd.s32 %v97_v8, %v93_v7  ;;  %v403_v7 = vld [vmem:[%s816_s1 + $0x8] sm:$0xff]  ;;  %v404_v8 = vld [vmem:[%s816_s1 + $0x10] sm:$0xff] }
  0xa5   :  { %v99_v11 = vadd.s32 536870912, %v98_v9 }
  0xa7   :  { %v100_v12 = vshrl.u32 %v99_v11, 30  ;;  %v405_v11 = vld [vmem:[%s816_s1 + $0x18] sm:$0xff] }
  0xa9   :  { %v101_v13 = vshll.u32 %v100_v12, 30  ;;  %v124_v34 = vsub.s32 4, %v100_v12 }
  0xab   :  { %v102_v14 = vsub.s32 %v98_v9, %v101_v13  ;;  %v125_v37 = vsel %vm40_vm8, %v124_v34, %v100_v12  ;;  %v583_v9 = vpack.c.bf16 %v403_v7, %v402_v4  ;;  %v586_v12 = vpack.c.bf16 %v405_v11, %v404_v8  ;;  %v406_v13 = vld [vmem:[%s816_s1 + $0x20] sm:$0xff] }
  0xac   :  { %v127_v39 = vsel %vm39_vm9, 0, %v125_v37 }
  0xad   :  { %v104_v16 = vsub.s32 0, %v102_v14  ;;  %v131_v40 = vadd.s32 3, %v127_v39  ;;  %584 = vmatpush3.bf16.msra.mxu0 %v583_v9 }
  0xae   :  { %585 = vmatprep.subr.bf16.mxu0 %v674_v49 }
  0xaf   :  { %v503_v18 = vmin.u32 %v104_v16, %v102_v14  ;;  %v132_v41 = vand.u32 3, %v131_v40 }
  0xb1   :  { %v106_v19 = vclz %v503_v18  ;;  %vm137_vm10 = vcmp.eq.s32.totalorder %v132_v41, 2  ;;  %vm134_vm11 = vcmp.eq.s32.totalorder %v132_v41, 0  ;;  %vm133_vm12 = vcmp.lt.s32.totalorder %v132_v41, 2  ;;  %587 = vmatpush3.bf16.msra.mxu0 %v586_v12  ;;  %v408_v18 = vld [vmem:[%s816_s1 + $0x30] sm:$0xff] }
  0xb2   :  { %588 = vmatprep.subr.bf16.mxu0 %v674_v49 }
  0xb3   :  { %v504_v20 = vadd.s32 4294967294, %v106_v19  ;;  %v409_v19 = vld [vmem:[%s816_s1 + $0x38] sm:$0xff] }
  0xb5   :  { %vm505_vm7 = vcmp.lt.s32.totalorder %v504_v20, 0 }
  0xb6   :  { %v109_v21 = vsel %vm505_vm7, 0, %v504_v20  ;;  %v592_v20 = vpack.c.bf16 %v409_v19, %v408_v18 }
  0xb7   :  { %v110_v23 = vsub.s32 32, %v109_v21  ;;  %v114_v24 = vsub.s32 4294967266, %v109_v21  ;;  %v111_v25 = vshll.u32 %v102_v14, %v109_v21  ;;  %v407_v14 = vld [vmem:[%s816_s1 + $0x28] sm:$0xff]  ;;  %v410_v21 = vld [vmem:[%s816_s1 + $0x40] sm:$0xff] }
  0xb8   :  { %v589_v16 = vpack.c.bf16 %v407_v14, %v406_v13 }
  0xb9   :  { %v112_v26 = vshrl.u32 %v94_v22, %v110_v23  ;;  %v115_v27 = vadd.s32 127, %v114_v24  ;;  %v411_v22 = vld [vmem:[%s816_s1 + $0x48] sm:$0xff]  ;;  %s678_s1 = smov [#allocation2]  }
  0xba   :  { %590 = vmatpush3.bf16.msra.mxu0 %v589_v16  ;;  %v595_v23 = vpack.c.bf16 %v411_v22, %v410_v21  ;;  %s494_s18 = sshll.u32 %s678_s1, 4  ;;  %s495_s18 = int_to_ptr.vmem [resolvable:$true] %s494_s18 }
  0xbb   :  { %v113_v28 = vor.u32 %v112_v26, %v111_v25  ;;  %v116_v29 = vshll.u32 %v115_v27, 23  ;;  %591 = vmatprep.subr.bf16.mxu0 %v674_v49  ;;  %s641_s19 = scalar_lea.vmem %s495_s18, 32  ;;  %p646_p1 = scmp.lt.s32.totalorder %s495_s18, %s495_s18 }
  0xbc   :  { %p642_p0 = scmp.ne.s32.totalorder %s495_s18, %s641_s19  ;;  %p647_p2 = scmp.lt.s32.totalorder %s641_s19, %s641_s19 }
  0xbd   :  { %v117_v30 = vor.u32 4788187, %v116_v29  ;;  %v120_v32 = vcvt.s32.f32 %v113_v28 }
  0xbe   :  { %593 = vmatpush3.bf16.msra.mxu0 %v592_v20  ;;  %p648_p3 = por %p647_p2, %p646_p1 }
  0xbf   :  { %v118_v31 = vand.u32 2147483647, %v117_v30  ;;  %594 = vmatprep.subr.bf16.mxu0 %v674_v49 }
  0xc0   :  { %p649_p4 = pnand %p648_p3, %p642_p0 }
  0xc1   :  { %v121_v33 = vmul.f32 %v120_v32, %v118_v31 }
  0xc2   :  { %596 = vmatpush3.bf16.msra.mxu0 %v595_v23 }
  0xc3   :  { %v122_v35 = vxor.u32 2147483648, %v121_v33 }
  0xc5   :  { %v123_v36 = vsel %vm40_vm8, %v122_v35, %v121_v33 }
  0xc6   :  { %v126_v38 = vsel %vm39_vm9, %v738_v15, %v123_v36  ;;  %v677_v15 = vmov 11  }
  0xc7   :  { %621 = vcosq.f32 %v126_v38  ;;  %619 = vset.pattern.permute.xlu1 %v677_v15  ;;  %620 = vset.pattern.permute.xlu0 %v677_v15 }
  0xc8   :  { %623 = vsinq.f32 %v126_v38  ;;  %261 = vperm.xlu1 %619, %v707_v0  }
  0xd1   :  { %v622_v42 = vpop.eup %621 }
  0xd2   :  { %v624_v43 = vpop.eup %623  ;;  %v138_v44 = vxor.u32 2147483648, %v622_v42 }
  0xd3   :  { %v135_v45 = vxor.u32 2147483648, %v624_v43 }
  0xd4   :  { %v139_v46 = vsel %vm137_vm10, %v138_v44, %v624_v43 }
  0xd5   :  { %v136_v47 = vsel %vm134_vm11, %v622_v42, %v135_v45 }
  0xd6   :  { %v140_v17 = vsel %vm133_vm12, %v136_v47, %v139_v46 }
  0xd7   :  { %v141_v48 = vsel %vm130_vm13, nan, %v140_v17 }
  0xd8   :  { %534 = vmatprep.subr.mxu1 %v141_v48 }
  0xd9   :  { %535 = vmatpush3.msra.mxu1 %v141_v48 }
  0xda   :  { %537 = vmatmul.mubr.msk.f32.vlgmr.msra.gmra.mrb[0].mxu1 %vm161_vm0, %v723_v5  ;;  %576 = vmatprep.subr.bf16.mxu1 %v674_v49  ;;  %v149_v5 = vpop.permute.xlu1 %148 }
  0xdb   :  { %539 = vmatprep.mubr.msk.f32.mxu1 %vm161_vm0, %v729_v6 }
  0xde   :  { %540 = vmatmul.mubr.msk.f32.gmra.mrb[2].mxu1 %vm161_vm0, %v716_v3  ;;  %v154_v56 = vpop.permute.xlu1 %153  ;;  %vm373_vm0 = vcmask 648192  }
  0xdf   :  { %550 = vmatprep.mubr.msk.f32.mxu1 %vm675_vm14, %v676_v50 }
 0x147   :  { %v262_v24 = vpop.permute.xlu1 %261 }
 0x1ad   :  { %v538_v52 = vpop.f32.mrb[0].mxu1 }
 0x1ae   :  { %v242_v53 = vadd.f32 %v538_v52, %v149_v5  ;;  %v236_v6 = vpop.f32.mrb[1].mxu1 }
 0x1af   :  { %v237_v54 = vadd.f32 %v236_v6, %v144_v51 }
 0x1b0   :  { %625 = vtanh.f32 %v242_v53 }
 0x1b1   :  { %627 = vtanh.f32 %v237_v54  ;;  %v541_v3 = vpop.f32.mrb[2].mxu1 }
 0x1b2   :  { %v252_v57 = vadd.f32 %v541_v3, %v159_v55  ;;  %v246_v58 = vpop.f32.mrb[3].mxu1 }
 0x1b3   :  { %v247_v59 = vadd.f32 %v246_v58, %v154_v56 }
 0x1b4   :  { %629 = vtanh.f32 %v252_v57 }
 0x1b5   :  { %631 = vtanh.f32 %v247_v59 }
 0x1ba   :  { %v626_v60 = vpop.eup %625 }
 0x1bb   :  { %v628_v61 = vpop.eup %627 }
 0x1bc   :  { %v577_v62 = vpack.c.bf16 %v626_v60, %v628_v61 }
 0x1be   :  { %v630_v0 = vpop.eup %629  ;;  %578 = vmatpush3.bf16.msra.mxu1 %v577_v62 }
 0x1bf   :  { %v632_v63 = vpop.eup %631  ;;  %579 = vmatprep.subr.bf16.mxu1 %v674_v49 }
 0x1c0   :  { %v580_v1 = vpack.c.bf16 %v630_v0, %v632_v63 }
 0x1c2   :  { %581 = vmatpush3.bf16.msra.mxu1 %v580_v1 }
 0x1c5   :  { %551 = vmatmul.mubr.msk.f32.vlgmr.msra.gmra.mrb[4].mxu1 %vm264_vm15, %v259_v2 }
 0x298   :  { %v334_v25 = vpop.f32.mrb[4].mxu1 }
 0x299   :  { %v335_v26 = vadd.f32 %v334_v25, %v262_v24  ;;  %v552_v27 = vpop.f32.mrb[5].mxu1 }
 0x29b   :  { %v339_v28 = vand.u32 2147483647, %v335_v26  ;;  %v357_v29 = vsub.f32 0.0, %v335_v26  ;;  %v354_v33 = vrot.slane %v335_v26, 7  ;;  %v366_v42 = vrot.slane %v335_v26, 1 }
 0x29c   :  { %v338_v5 = vmax.f32 %v335_v26, 0.0 }
 0x29d   :  { %v340_v30 = vsub.f32 0.0, %v339_v28  ;;  %v358_v31 = vmul.f32 1.442695, %v357_v29  ;;  %v356_v35 = vsub.f32 %v735_v10, %v354_v33 }
 0x29f   :  { %v341_v32 = vmul.f32 1.442695, %v340_v30  ;;  %633 = vpow2.f32 %v358_v31 }
 0x2a1   :  { %635 = vpow2.f32 %v341_v32 }
 0x2a9   :  { %v634_v34 = vpop.eup %633 }
 0x2aa   :  { %v361_v36 = vrot.slane %v634_v34, 1 }
 0x2ab   :  { %v636_v37 = vpop.eup %635 }
 0x2ac   :  { %v363_v38 = vmul.f32 %v361_v36, %v356_v35  ;;  %v343_v39 = vadd.f32 1.0, %v636_v37  ;;  %v346_v43 = vmul.f32 -0.5, %v636_v37  ;;  %v349_v17 = vand.u32 2147483647, %v636_v37 }
 0x2ae   :  { %v364_v40 = vmul.f32 -0.5, %v363_v38  ;;  %637 = vlog2.f32 %v343_v39  ;;  %v347_v46 = vadd.f32 1.0, %v346_v43  ;;  %vm350_vm1 = vcmp.lt.f32.partialorder %v349_v17, 0.0004427343 }
 0x2b0   :  { %v365_v41 = vmul.f32 %v364_v40, %v363_v38  ;;  %v348_v15 = vmul.f32 %v636_v37, %v347_v46 }
 0x2b2   :  { %v368_v44 = vsub.f32 %v365_v41, %v366_v42 }
 0x2b4   :  { %v511_v45 = vadd.f32 -0.9189385, %v368_v44 }
 0x2b6   :  { %v371_v47 = vrot.slane %v511_v45, 1 }
 0x2b8   :  { %v638_v48 = vpop.eup %637  ;;  %v374_v49 = vsel %vm373_vm0, %v371_v47, 0.0 }
 0x2b9   :  { %v345_v50 = vmul.f32 0.6931472, %v638_v48  ;;  %v375_v51 = vrot.slane %v374_v49, 4 }
 0x2bb   :  { %v351_v52 = vsel %vm350_vm1, %v348_v15, %v345_v50  ;;  %v376_v53 = vadd.f32 %v375_v51, %v374_v49 }
 0x2bc   :  { %v352_v6 = vadd.f32 %v351_v52, %v338_v5 }
 0x2bd   :  { %v377_v55 = vrot.slane %v376_v53, 2 }
 0x2be   :  { %v382_v54 = vadd.f32 1e-08, %v352_v6  ;;  %v389_v60 = vmul.f32 %v352_v6, %v735_v10 }
 0x2bf   :  { %v378_v3 = vadd.f32 %v377_v55, %v376_v53 }
 0x2c0   :  { %639 = vlog2.f32 %v382_v54  ;;  %v391_v63 = vrot.slane %v389_v60, 1 }
 0x2c1   :  { %v379_v56 = vrot.slane %v378_v3, 1 }
 0x2c3   :  { %v380_v58 = vadd.f32 %v379_v56, %v378_v3 }
 0x2c5   :  { %v381_v62 = vmul.f32 %v380_v58, %v735_v10 }
 0x2c7   :  { %v395_v2 = vrot.slane %v381_v62, 3 }
 0x2ca   :  { %v640_v57 = vpop.eup %639 }
 0x2cb   :  { %v384_v59 = vmul.f32 0.6931472, %v640_v57 }
 0x2cd   :  { %v386_v61 = vrot.slane %v384_v59, 1 }
 0x2cf   :  { %v388_v0 = vmul.f32 %v386_v61, %v735_v10 }
 0x2d1   :  { %v393_v1 = vadd.f32 %v391_v63, %v388_v0 }
 0x2d3   :  { %v398_v4 = vrot.slane %v393_v1, 2 }
 0x2d5   :  { %v401_v7 = vsel %vm400_vm2, %v395_v2, %v398_v4 }
 0x2d6   :  { %574 = vmatmul.mubr.msk.f32.vlgmr.msra.gmra.mrb[0].mxu0 %vm412_vm3, %v401_v7 }
 0x3a9   :  { %v482_v8 = vpop.f32.mrb[0].mxu0 }
 0x3aa   :  { %487 = vst.msk [vmem:[#allocation2] sm:$0x3] %vm486_vm4, %v482_v8  ;;  %v575_v9 = vpop.f32.mrb[1].mxu0 }
 0x3ab   :  { %652 = shalt.err (!%p649_p4)
}
 0x3ac   :  { %s653_s22 = scalar_lea.hbm %s819_s4, 32 }
 0x3ad   :  { %p654_p5 = scmp.ne.s32.totalorder %s819_s4, %s653_s22  ;;  %p657_p6 = scmp.lt.u32.totalorder %s653_s22, %s819_s4 }
 0x3af   :  { %p659_p7 = pnand %p657_p6, %p654_p5 }
 0x3b1   :  { %662 = shalt.err (!%p659_p7)
}
 0x3b2   :  { %497 = dma.vmem_to_hbm [thread:$0]  %s495_s18, 32, %s819_s4, [#allocation3]  }
 0x3b3   :  { %663 = dma.done.wait [#allocation3], 32  }
 0x3b4   :  { %664 = vsyncadd [#allocation3], 4294967264 }
 0x3b5   :  { %501 = vsyncpa [#allocation3], 1 }

</bundles_post_ra>
